<compile_context>
chip_gen: v5e
topology: v5e:2x2
jax: 0.10.0
libtpu: 0.0.40
codegen_flags: <defaults>
</compile_context>

<pallas_src>
import functools

import jax
import jax.numpy as jnp
from jax import lax
from jax.experimental import pallas as pl
from jax.experimental.pallas import tpu as pltpu


def _round_up(a, m):
    return (a + m - 1) // m * m


_VMEM_CFG = None


def _vmem_limit_and_budget():
    """Generation-aware VMEM sizing: ~3/4 of physical VMEM as the scoped limit,
    ~85% of that as the block-selection budget."""
    global _VMEM_CFG
    if _VMEM_CFG is None:
        cap = 64 * 1024 * 1024  # conservative default (v7x per-TC VMEM)
        try:
            info = pltpu.get_tpu_info()
            cap = int(getattr(info, "vmem_capacity_bytes", cap) or cap)
        except Exception:
            pass
        limit = max(min((cap * 3) // 4, cap - 8 * 1024 * 1024), cap // 2)
        budget = (limit * 17) // 20
        _VMEM_CFG = (limit, budget)
    return _VMEM_CFG


def _compiler_params():
    limit, _ = _vmem_limit_and_budget()
    return pltpu.CompilerParams(
        dimension_semantics=("parallel", "parallel"),
        vmem_limit_bytes=limit)


def _choose_group_block(n_slices, num_groups, feat_pad, param_feat,
                        in_itemsize, param_itemsize, num_batch_steps):
    """Largest group chunk (multiple of 8, or G itself) whose block fits VMEM.

    feat_pad: per-group feature element count, already padded to the VMEM tile
    (sublane/lane) layout.  Returns None when even the smallest legal chunk
    does not fit -> the caller takes the per-(group, batch) fallback.
    """
    _, budget = _vmem_limit_and_budget()

    def need(g):
        gp = _round_up(g, 8)  # sublane padding when the chunk sits second-minor
        io = 4 * n_slices * gp * feat_pad * in_itemsize        # in+out, double-buffered
        work = (2 * n_slices + 3) * gp * feat_pad * 4          # f32 working set (conservative)
        par = 4 * gp * param_feat * param_itemsize             # weight+bias, double-buffered
        return io + work + par

    candidates = {num_groups}
    candidates.update(g for g in range(8, num_groups, 8) if num_groups % g == 0)
    fitting = sorted((g for g in candidates if need(g) <= budget), reverse=True)
    if not fitting:
        return None

    def steps(g):
        return num_batch_steps * (num_groups // g)

    # Prefer the largest chunk that still gives >= 2 (ideally even) grid steps
    # so both v7x TensorCores get balanced work; otherwise just the largest.
    for ok in (lambda g: steps(g) >= 2 and steps(g) % 2 == 0,
               lambda g: steps(g) >= 2):
        pref = [g for g in fitting if ok(g)]
        if pref:
            return pref[0]
    return fitting[0]


# ----------------------------------------------------------------------------
# Kernels
# ----------------------------------------------------------------------------
def _gn_rp_kernel(x_ref, w_ref, b_ref, o_ref, *, eps, red_axes, param_bcast):
    """Relevance-propagation GroupNorm for one (group-chunk, batch) block.

    x_ref: (S, g, Cg, HW) or (S, g, D) or (S, Cg, HW) (fallback).
    w_ref/b_ref: (g, Cg) when param_bcast (broadcast over HW in-kernel),
    otherwise already shaped to broadcast against x's trailing dims.
    Statistics are in f32; the apply stays in the input dtype.
    """
    x = x_ref[...]
    f32 = jnp.float32
    adt = x.dtype

    # per-contribution means (mean_as_contribution=True), accumulated in f32
    mu_s = jnp.mean(x, axis=red_axes, keepdims=True, dtype=f32)
    # statistics of x.sum(0): mean of the total == sum of the per-slice means
    mu_t = jnp.sum(mu_s, axis=0)
    x_total = jnp.sum(x, axis=0, dtype=f32)
    d_t = x_total - mu_t
    var_t = jnp.mean(d_t * d_t, axis=red_axes, keepdims=True)
    inv_std = lax.rsqrt(var_t + eps)            # one EUP rsqrt per group

    w = w_ref[...].astype(f32)
    b = b_ref[...]
    if param_bcast:                             # (g, Cg) -> broadcast over HW
        w = w[..., None]
        b = b[..., None]
    scale = (w * inv_std).astype(adt)           # fold affine weight into 1/std
    y = (x - mu_s.astype(adt)) * scale[None]

    # bias only on the s == 0 contribution; disjoint stores, no double write
    o_ref[0] = (y[0] + b.astype(adt)).astype(o_ref.dtype)
    s = x.shape[0]
    if s > 1:
        o_ref[pl.ds(1, s - 1)] = y[1:].astype(o_ref.dtype)


def _gn_std_kernel(x_ref, w_ref, b_ref, o_ref, *, eps, red_axes, param_bcast):
    """Standard GroupNorm for one (group-chunk, batch) block."""
    x = x_ref[...]
    f32 = jnp.float32
    adt = x.dtype

    mu = jnp.mean(x, axis=red_axes, keepdims=True, dtype=f32)
    xc = x.astype(f32) - mu
    var = jnp.mean(xc * xc, axis=red_axes, keepdims=True)
    inv_std = lax.rsqrt(var + eps)

    w = w_ref[...].astype(f32)
    b = b_ref[...]
    if param_bcast:
        w = w[..., None]
        b = b[..., None]
    scale = (w * inv_std).astype(adt)
    y = (x - mu.astype(adt)) * scale + b.astype(adt)
    o_ref[...] = y.astype(o_ref.dtype)


# ----------------------------------------------------------------------------
# 5-D path: relevance-propagation GroupNorm
# ----------------------------------------------------------------------------
def groupnorm_rp_forward(x, weight, bias, num_groups, eps=1e-5, force_fallback=False):
    """x: (S, B, C, H, W)."""
    S, B, C, H, W = x.shape
    G = num_groups
    Cg = C // G
    HW = H * W
    D = Cg * HW
    cparams = _compiler_params()
    use_chw = (HW % 128 == 0)                   # lane-dense stores without expansion

    g_blk = None
    if not force_fallback:
        if use_chw:
            feat_pad = _round_up(Cg, 8) * HW
            param_feat, param_isz = Cg, 4
        else:
            feat_pad = _round_up(D, 128)
            param_feat, param_isz = _round_up(D, 128), x.dtype.itemsize
        g_blk = _choose_group_block(S, G, feat_pad, param_feat,
                                    x.dtype.itemsize, param_isz, B)

    if g_blk is not None and use_chw:
        # (Cg, HW) trailing layout, tiny unexpanded (G, Cg) params.
        xr = x.reshape(S, B, G, Cg, HW)
        wr = weight.astype(jnp.float32).reshape(G, Cg)
        br = bias.astype(jnp.float32).reshape(G, Cg)
        out = pl.pallas_call(
            functools.partial(_gn_rp_kernel, eps=float(eps),
                              red_axes=(-2, -1), param_bcast=True),
            out_shape=jax.ShapeDtypeStruct((S, B, G, Cg, HW), x.dtype),
            grid=(G // g_blk, B),
            in_specs=[
                pl.BlockSpec((S, pl.Squeezed(), g_blk, Cg, HW),
                             lambda j, b: (0, b, j, 0, 0)),
                pl.BlockSpec((g_blk, Cg), lambda j, b: (j, 0)),
                pl.BlockSpec((g_blk, Cg), lambda j, b: (j, 0)),
            ],
            out_specs=pl.BlockSpec((S, pl.Squeezed(), g_blk, Cg, HW),
                                   lambda j, b: (0, b, j, 0, 0)),
            compiler_params=cparams,
        )(xr, wr, br)
        return out.reshape(S, B, C, H, W)

    if g_blk is not None:
        # Lane-dense D = Cg*HW layout (free reshape). Params expanded once in
        # x.dtype; group-chunk is the OUTER grid axis so the param block index
        # is constant across the inner batch axis (kept resident, no re-DMA).
        xr = x.reshape(S, B, G, D)
        wr = jnp.repeat(weight.astype(x.dtype).reshape(G, Cg), HW, axis=1)
        br = jnp.repeat(bias.astype(x.dtype).reshape(G, Cg), HW, axis=1)
        out = pl.pallas_call(
            functools.partial(_gn_rp_kernel, eps=float(eps),
                              red_axes=(-1,), param_bcast=False),
            out_shape=jax.ShapeDtypeStruct((S, B, G, D), x.dtype),
            grid=(G // g_blk, B),
            in_specs=[
                pl.BlockSpec((S, pl.Squeezed(), g_blk, D),
                             lambda j, b: (0, b, j, 0)),
                pl.BlockSpec((g_blk, D), lambda j, b: (j, 0)),
                pl.BlockSpec((g_blk, D), lambda j, b: (j, 0)),
            ],
            out_specs=pl.BlockSpec((S, pl.Squeezed(), g_blk, D),
                                   lambda j, b: (0, b, j, 0)),
            compiler_params=cparams,
        )(xr, wr, br)
        return out.reshape(S, B, C, H, W)

    # Fallback: per-(group, batch) grid with (S, Cg, HW) blocks and tiny
    # (Cg, 1) params.
    # TODO(synk): a two-pass (stats kernel + tiled lane-dense apply) scheme
    # would scale to arbitrarily large S*Cg*H*W; not needed for these shapes.
    xr = x.reshape(S, B, G, Cg, HW)
    wr = weight.astype(jnp.float32).reshape(G, Cg, 1)
    br = bias.astype(jnp.float32).reshape(G, Cg, 1)
    out = pl.pallas_call(
        functools.partial(_gn_rp_kernel, eps=float(eps),
                          red_axes=(-2, -1), param_bcast=False),
        out_shape=jax.ShapeDtypeStruct((S, B, G, Cg, HW), x.dtype),
        grid=(G, B),
        in_specs=[
            pl.BlockSpec((S, pl.Squeezed(), pl.Squeezed(), Cg, HW),
                         lambda g, b: (0, b, g, 0, 0)),
            pl.BlockSpec((pl.Squeezed(), Cg, 1), lambda g, b: (g, 0, 0)),
            pl.BlockSpec((pl.Squeezed(), Cg, 1), lambda g, b: (g, 0, 0)),
        ],
        out_specs=pl.BlockSpec((S, pl.Squeezed(), pl.Squeezed(), Cg, HW),
                               lambda g, b: (0, b, g, 0, 0)),
        compiler_params=cparams,
    )(xr, wr, br)
    return out.reshape(S, B, C, H, W)


# ----------------------------------------------------------------------------
# 4-D path: standard GroupNorm (the self.layer(x) branch)
# ----------------------------------------------------------------------------
def groupnorm_std_forward(x, weight, bias, num_groups, eps=1e-5, force_fallback=False):
    """x: (B, C, H, W)."""
    B, C, H, W = x.shape
    G = num_groups
    Cg = C // G
    HW = H * W
    D = Cg * HW
    cparams = _compiler_params()
    use_chw = (HW % 128 == 0)

    g_blk = None
    if not force_fallback:
        if use_chw:
            feat_pad = _round_up(Cg, 8) * HW
            param_feat, param_isz = Cg, 4
        else:
            feat_pad = _round_up(D, 128)
            param_feat, param_isz = _round_up(D, 128), x.dtype.itemsize
        g_blk = _choose_group_block(1, G, feat_pad, param_feat,
                                    x.dtype.itemsize, param_isz, B)

    if g_blk is not None and use_chw:
        xr = x.reshape(B, G, Cg, HW)
        wr = weight.astype(jnp.float32).reshape(G, Cg)
        br = bias.astype(jnp.float32).reshape(G, Cg)
        out = pl.pallas_call(
            functools.partial(_gn_std_kernel, eps=float(eps),
                              red_axes=(-2, -1), param_bcast=True),
            out_shape=jax.ShapeDtypeStruct((B, G, Cg, HW), x.dtype),
            grid=(G // g_blk, B),
            in_specs=[
                pl.BlockSpec((pl.Squeezed(), g_blk, Cg, HW),
                             lambda j, b: (b, j, 0, 0)),
                pl.BlockSpec((g_blk, Cg), lambda j, b: (j, 0)),
                pl.BlockSpec((g_blk, Cg), lambda j, b: (j, 0)),
            ],
            out_specs=pl.BlockSpec((pl.Squeezed(), g_blk, Cg, HW),
                                   lambda j, b: (b, j, 0, 0)),
            compiler_params=cparams,
        )(xr, wr, br)
        return out.reshape(B, C, H, W)

    if g_blk is not None:
        xr = x.reshape(B, G, D)
        wr = jnp.repeat(weight.astype(x.dtype).reshape(G, Cg), HW, axis=1)
        br = jnp.repeat(bias.astype(x.dtype).reshape(G, Cg), HW, axis=1)
        out = pl.pallas_call(
            functools.partial(_gn_std_kernel, eps=float(eps),
                              red_axes=(-1,), param_bcast=False),
            out_shape=jax.ShapeDtypeStruct((B, G, D), x.dtype),
            grid=(G // g_blk, B),
            in_specs=[
                pl.BlockSpec((pl.Squeezed(), g_blk, D), lambda j, b: (b, j, 0)),
                pl.BlockSpec((g_blk, D), lambda j, b: (j, 0)),
                pl.BlockSpec((g_blk, D), lambda j, b: (j, 0)),
            ],
            out_specs=pl.BlockSpec((pl.Squeezed(), g_blk, D),
                                   lambda j, b: (b, j, 0)),
            compiler_params=cparams,
        )(xr, wr, br)
        return out.reshape(B, C, H, W)

    # Fallback: per-(group, batch) grid.
    xr = x.reshape(B, G, Cg, HW)
    wr = weight.astype(jnp.float32).reshape(G, Cg, 1)
    br = bias.astype(jnp.float32).reshape(G, Cg, 1)
    out = pl.pallas_call(
        functools.partial(_gn_std_kernel, eps=float(eps),
                          red_axes=(-2, -1), param_bcast=False),
        out_shape=jax.ShapeDtypeStruct((B, G, Cg, HW), x.dtype),
        grid=(G, B),
        in_specs=[
            pl.BlockSpec((pl.Squeezed(), pl.Squeezed(), Cg, HW),
                         lambda g, b: (b, g, 0, 0)),
            pl.BlockSpec((pl.Squeezed(), Cg, 1), lambda g, b: (g, 0, 0)),
            pl.BlockSpec((pl.Squeezed(), Cg, 1), lambda g, b: (g, 0, 0)),
        ],
        out_specs=pl.BlockSpec((pl.Squeezed(), pl.Squeezed(), Cg, HW),
                               lambda g, b: (b, g, 0, 0)),
        compiler_params=cparams,
    )(xr, wr, br)
    return out.reshape(B, C, H, W)


# ----------------------------------------------------------------------------
# Module-like wrapper
# ----------------------------------------------------------------------------
class GroupNormPallas:
    def __init__(self, num_groups, num_channels, eps=1e-5, affine=True,
                 weight=None, bias=None):
        self.num_groups = num_groups
        self.num_channels = num_channels
        self.eps = eps
        if affine:
            assert weight is not None and bias is not None
            self.weight = weight
            self.bias = bias
        else:
            self.weight = jnp.ones((num_channels,), jnp.float32)
            self.bias = jnp.zeros((num_channels,), jnp.float32)

    def __call__(self, x, force_fallback=False):
        if x.ndim == 5:
            return groupnorm_rp_forward(x, self.weight, self.bias,
                                        self.num_groups, self.eps, force_fallback)
        return groupnorm_std_forward(x, self.weight, self.bias,
                                     self.num_groups, self.eps, force_fallback)


# ----------------------------------------------------------------------------
# Pure-JAX references (mirror the PyTorch forward line-by-line)
# ----------------------------------------------------------------------------
def _ref_rp(x, weight, bias, G, eps):
    S, B, C, H, W = x.shape
    Cg = C // G
    a = x.reshape(S, B, G, Cg, H, W)
    x_total = x.sum(0).reshape(B, G, Cg, H, W)
    mu_t = x_total.mean(axis=(-1, -2, -3), keepdims=True)
    var = ((x_total - mu_t) ** 2).mean(axis=(-1, -2, -3), keepdims=True)
    std = jnp.sqrt(var + eps)
    mu = a.mean(axis=(-1, -2, -3), keepdims=True)
    a = a - mu
    a = a / std[None]
    a = a.reshape(S, B, C, H, W)
    a = a * weight.reshape(1, 1, -1, 1, 1)
    a = a.at[0].add(bias.reshape(1, -1, 1, 1))
    return a


def _ref_std(x, weight, bias, G, eps):
    B, C, H, W = x.shape
    Cg = C // G
    xr = x.reshape(B, G, Cg, H, W)
    mu = xr.mean(axis=(-1, -2, -3), keepdims=True)
    var = ((xr - mu) ** 2).mean(axis=(-1, -2, -3), keepdims=True)
    y = (xr - mu) / jnp.sqrt(var + eps)
    y = y.reshape(B, C, H, W)
    return y * weight.reshape(1, -1, 1, 1) + bias.reshape(1, -1, 1, 1)


if __name__ == "__main__":
    key = jax.random.PRNGKey(0)
    k1, k2, k3, k4, kw, kb = jax.random.split(key, 6)

    num_groups, num_channels, eps = 2, 8, 1e-5
    weight = 1.0 + 0.1 * jax.random.normal(kw, (num_channels,), jnp.float32)
    bias = 0.1 * jax.random.normal(kb, (num_channels,), jnp.float32)
    gn = GroupNormPallas(num_groups, num_channels, eps=eps, affine=True,
                         weight=weight, bias=bias)

    # 5-D relevance-propagation path, HW = 64 -> lane-dense D layout
    x5 = jax.random.normal(k1, (3, 2, num_channels, 8, 8), jnp.float32)
    ref5 = _ref_rp(x5, weight, bias, num_groups, eps)
    out5 = jax.block_until_ready(gn(x5))
    assert out5.shape == x5.shape
    assert jnp.allclose(out5, ref5, atol=1e-4, rtol=1e-4), "5D dense path mismatch"

    # 5-D path, HW = 128 -> (Cg, HW) layout with unexpanded params
    x5b = jax.random.normal(k2, (3, 2, num_channels, 8, 16), jnp.float32)
    ref5b = _ref_rp(x5b, weight, bias, num_groups, eps)
    out5b = jax.block_until_ready(gn(x5b))
    assert jnp.allclose(out5b, ref5b, atol=1e-4, rtol=1e-4), "5D chw path mismatch"

    # forced per-(group, batch) fallback
    out5f = jax.block_until_ready(
        groupnorm_rp_forward(x5, weight, bias, num_groups, eps, force_fallback=True))
    assert jnp.allclose(out5f, ref5, atol=1e-4, rtol=1e-4), "5D fallback mismatch"

    # 4-D standard GroupNorm path, HW = 64 -> lane-dense D layout
    x4 = jax.random.normal(k3, (2, num_channels, 8, 8), jnp.float32)
    ref4 = _ref_std(x4, weight, bias, num_groups, eps)
    out4 = jax.block_until_ready(gn(x4))
    assert out4.shape == x4.shape
    assert jnp.allclose(out4, ref4, atol=1e-4, rtol=1e-4), "4D dense path mismatch"

    # 4-D path, HW = 128 -> (Cg, HW) layout with unexpanded params
    x4b = jax.random.normal(k4, (2, num_channels, 8, 16), jnp.float32)
    ref4b = _ref_std(x4b, weight, bias, num_groups, eps)
    out4b = jax.block_until_ready(gn(x4b))
    assert jnp.allclose(out4b, ref4b, atol=1e-4, rtol=1e-4), "4D chw path mismatch"

    # forced fallback for the 4-D path
    out4f = jax.block_until_ready(
        groupnorm_std_forward(x4, weight, bias, num_groups, eps, force_fallback=True))
    assert jnp.allclose(out4f, ref4, atol=1e-4, rtol=1e-4), "4D fallback mismatch"

    print("KERNEL_OK")
</pallas_src>

<mosaic_0001>
module attributes {stable_mosaic.version = 11 : i64} {
  func.func @_gn_rp_kernel(%arg0: i32, %arg1: i32, %arg2: memref<3x1x2x256xf32, #tpu.memory_space<vmem>>, %arg3: memref<2x256xf32, #tpu.memory_space<vmem>>, %arg4: memref<2x256xf32, #tpu.memory_space<vmem>>, %arg5: memref<3x1x2x256xf32, #tpu.memory_space<vmem>>) attributes {dimension_semantics = [#tpu.dimension_semantics<parallel>, #tpu.dimension_semantics<parallel>], iteration_bounds = array<i64: 1, 2>, scalar_prefetch = 0 : i64, scratch_operands = 0 : i64, tpu.core_type = #tpu.core_type<tc>, window_params = [{transform_indices = @transform_0, window_bounds = array<i64: 3, 1, 2, 256>}, {transform_indices = @transform_1, window_bounds = array<i64: 2, 256>}, {transform_indices = @transform_2, window_bounds = array<i64: 2, 256>}, {transform_indices = @transform_3, window_bounds = array<i64: 3, 1, 2, 256>}]} {
    %c0 = arith.constant 0 : index
    %c0_0 = arith.constant 0 : index
    %c0_1 = arith.constant 0 : index
    %c0_2 = arith.constant 0 : index
    %0 = vector.load %arg2[%c0, %c0_0, %c0_1, %c0_2] : memref<3x1x2x256xf32, #tpu.memory_space<vmem>>, vector<3x1x2x256xf32>
    %1 = vector.shape_cast %0 : vector<3x1x2x256xf32> to vector<3x2x256xf32>
    %cst = arith.constant dense<0.000000e+00> : vector<3x2xf32>
    %2 = vector.multi_reduction <add>, %1, %cst [2] : vector<3x2x256xf32> to vector<3x2xf32>
    %3 = vector.shape_cast %2 : vector<3x2xf32> to vector<3x2x1xf32>
    %cst_3 = arith.constant 2.560000e+02 : f32
    %4 = vector.broadcast %cst_3 : f32 to vector<3x2x1xf32>
    %5 = arith.divf %3, %4 : vector<3x2x1xf32>
    %cst_4 = arith.constant dense<0.000000e+00> : vector<2x1xf32>
    %6 = vector.multi_reduction <add>, %5, %cst_4 [0] : vector<3x2x1xf32> to vector<2x1xf32>
    %cst_5 = arith.constant dense<0.000000e+00> : vector<2x256xf32>
    %7 = vector.multi_reduction <add>, %1, %cst_5 [0] : vector<3x2x256xf32> to vector<2x256xf32>
    %8 = vector.broadcast %6 : vector<2x1xf32> to vector<2x256xf32>
    %9 = arith.subf %7, %8 : vector<2x256xf32>
    %10 = arith.mulf %9, %9 : vector<2x256xf32>
    %cst_6 = arith.constant dense<0.000000e+00> : vector<2xf32>
    %11 = vector.multi_reduction <add>, %10, %cst_6 [1] : vector<2x256xf32> to vector<2xf32>
    %12 = vector.shape_cast %11 : vector<2xf32> to vector<2x1xf32>
    %cst_7 = arith.constant 2.560000e+02 : f32
    %13 = vector.broadcast %cst_7 : f32 to vector<2x1xf32>
    %14 = arith.divf %12, %13 : vector<2x1xf32>
    %cst_8 = arith.constant 9.99999974E-6 : f32
    %15 = vector.broadcast %cst_8 : f32 to vector<2x1xf32>
    %16 = arith.addf %14, %15 : vector<2x1xf32>
    %17 = math.rsqrt %16 : vector<2x1xf32>
    %c0_9 = arith.constant 0 : index
    %c0_10 = arith.constant 0 : index
    %18 = vector.load %arg3[%c0_9, %c0_10] : memref<2x256xf32, #tpu.memory_space<vmem>>, vector<2x256xf32>
    %c0_11 = arith.constant 0 : index
    %c0_12 = arith.constant 0 : index
    %19 = vector.load %arg4[%c0_11, %c0_12] : memref<2x256xf32, #tpu.memory_space<vmem>>, vector<2x256xf32>
    %20 = vector.broadcast %17 : vector<2x1xf32> to vector<2x256xf32>
    %21 = arith.mulf %18, %20 : vector<2x256xf32>
    %22 = vector.broadcast %5 : vector<3x2x1xf32> to vector<3x2x256xf32>
    %23 = arith.subf %1, %22 : vector<3x2x256xf32>
    %24 = vector.shape_cast %21 : vector<2x256xf32> to vector<1x2x256xf32>
    %25 = vector.broadcast %24 : vector<1x2x256xf32> to vector<3x2x256xf32>
    %26 = arith.mulf %23, %25 : vector<3x2x256xf32>
    %27 = vector.extract_strided_slice %26 {offsets = [0, 0, 0], sizes = [1, 2, 256], strides = [1, 1, 1]} : vector<3x2x256xf32> to vector<1x2x256xf32>
    %28 = vector.shape_cast %27 : vector<1x2x256xf32> to vector<2x256xf32>
    %29 = arith.addf %28, %19 : vector<2x256xf32>
    %c0_13 = arith.constant 0 : index
    %c0_14 = arith.constant 0 : index
    %c0_15 = arith.constant 0 : index
    %c0_16 = arith.constant 0 : index
    %30 = vector.load %arg5[%c0_13, %c0_14, %c0_15, %c0_16] : memref<3x1x2x256xf32, #tpu.memory_space<vmem>>, vector<1x1x2x256xf32>
    %31 = vector.shape_cast %30 : vector<1x1x2x256xf32> to vector<2x256xf32>
    %32 = vector.shape_cast %29 : vector<2x256xf32> to vector<1x1x2x256xf32>
    tpu.vector_store %arg5[%c0_13, %c0_14, %c0_15, %c0_16], %32 {strides = array<i32>} : memref<3x1x2x256xf32, #tpu.memory_space<vmem>>, vector<1x1x2x256xf32>,
    %33 = vector.extract_strided_slice %26 {offsets = [1, 0, 0], sizes = [2, 2, 256], strides = [1, 1, 1]} : vector<3x2x256xf32> to vector<2x2x256xf32>
    %c1 = arith.constant 1 : index
    %c0_17 = arith.constant 0 : index
    %c0_18 = arith.constant 0 : index
    %c0_19 = arith.constant 0 : index
    %34 = vector.load %arg5[%c1, %c0_17, %c0_18, %c0_19] : memref<3x1x2x256xf32, #tpu.memory_space<vmem>>, vector<2x1x2x256xf32>
    %35 = vector.shape_cast %34 : vector<2x1x2x256xf32> to vector<2x2x256xf32>
    %36 = vector.shape_cast %33 : vector<2x2x256xf32> to vector<2x1x2x256xf32>
    tpu.vector_store %arg5[%c1, %c0_17, %c0_18, %c0_19], %36 {strides = array<i32>} : memref<3x1x2x256xf32, #tpu.memory_space<vmem>>, vector<2x1x2x256xf32>,
    return
  }
  func.func @transform_0(%arg0: i32, %arg1: i32) -> (i32, i32, i32, i32) {
    %c0_i32 = arith.constant 0 : i32
    %c0_i32_0 = arith.constant 0 : i32
    %c0_i32_1 = arith.constant 0 : i32
    return %c0_i32, %arg1, %arg0, %c0_i32_0 : i32, i32, i32, i32
  }
  func.func @transform_1(%arg0: i32, %arg1: i32) -> (i32, i32) {
    %c0_i32 = arith.constant 0 : i32
    %c0_i32_0 = arith.constant 0 : i32
    return %arg0, %c0_i32 : i32, i32
  }
  func.func @transform_2(%arg0: i32, %arg1: i32) -> (i32, i32) {
    %c0_i32 = arith.constant 0 : i32
    %c0_i32_0 = arith.constant 0 : i32
    return %arg0, %c0_i32 : i32, i32
  }
  func.func @transform_3(%arg0: i32, %arg1: i32) -> (i32, i32, i32, i32) {
    %c0_i32 = arith.constant 0 : i32
    %c0_i32_0 = arith.constant 0 : i32
    %c0_i32_1 = arith.constant 0 : i32
    return %c0_i32, %arg1, %arg0, %c0_i32_0 : i32, i32, i32, i32
  }
}

</mosaic_0001>

<bundles_post_ra>
// kernel: tpu_custom_call.1
= control target key start
LH: loop header
LB: loop body
LE: loop exit
PB: predicated region body
PF: predicated region fallthrough
CT: control target
= control target key end

     0   :  { %s1034_s0 = inlined_call_operand.hbm [shape: f32[3,2,2,256], index: 0, kind: input, shape index: {}]   ;;  %s1035_s1 = inlined_call_operand.hbm [shape: f32[2,256], index: 1, kind: input, shape index: {}]   ;;  %s1036_s2 = inlined_call_operand.hbm [shape: f32[2,256], index: 2, kind: input, shape index: {}]   ;;  %s1037_s3 = inlined_call_operand.hbm [shape: f32[3,2,2,256], index: 3, kind: output, shape index: {}]  }
   0x1   :  { %1038 = sst [smem:[#allocation12_spill]] %s1035_s1 }
   0x2   :  { %1039 = sst [smem:[#allocation13_spill]] %s1036_s2 }
   0x3   :  { %8 = vsyncpa [#allocation3], 0 }
   0x4   :  { %10 = vsyncpa [#allocation3 + $0x1], 0 }
   0x5   :  { %11 = vsyncpa [#allocation6], 0 }
   0x6   :  { %12 = vsyncpa [#allocation4], 0 }
   0x7   :  { %14 = vsyncpa [#allocation4 + $0x1], 0  ;;  %s844_s12 = smov 0   ;;  %s846_s13 = smov 0  }
   0x8   :  { %s848_s14 = smov 0   ;;  %s850_s15 = smov 0  }
   0x9   :  { %s852_s16 = smov 0   ;;  %s854_s17 = smov 0  }
   0xa LB: > { %s520_s18 = sadd.s32 4294967295, %s812_s17   ;;  %s521_s19 = sadd.s32 4294967294, %s812_s17   ;;  %s812_s17 = sphi %s854_s17, %s20_s17   ;;  %s808_s16 = sphi %s852_s16, %s1053_s16   ;;  %s804_s15 = sphi %s850_s15, %s1052_s15   ;;  %s800_s14 = sphi %s848_s14, %s1051_s14   ;;  %s796_s13 = sphi %s846_s13, %s1050_s13   ;;  %s792_s12 = sphi %s844_s12, %s1049_s12  }
   0xb   : > { %s41_s20 = sadd.s32 1, %s800_s14  ;;  %p48_p0 = scmp.ne.s32.totalorder %s800_s14, %s796_s13 }
   0xc   : > { %p49_p1 = scmp.eq.s32.totalorder %s812_s17, 0  ;;  %p54_p2 = scmp.ne.s32.totalorder %s796_s13, %s792_s12 }
   0xd   : > { %p882_p3 = scmp.eq.s32.totalorder %s520_s18, 0  ;;  %p132_p4 = scmp.eq.s32.totalorder %s520_s18, 1 }
   0xe   : > { %p886_p5 = por %p49_p1, %p48_p0  ;;  %p138_p6 = scmp.eq.s32.totalorder %s521_s19, 1 }
   0xf   : > { %p892_p7 = por %p882_p3, %p54_p2  ;;  %p896_p8 = por %p132_p4, %p48_p0 }
  0x10   : > { %p900_p9 = por %p138_p6, %p54_p2  ;;  %p522_p10 = scmp.ge.s32.totalorder %s812_s17, 1 }
  0x11   : > { %p145_p11 = scmp.lt.s32.totalorder %s812_s17, 3  ;;  %s1045_s1 = sld [smem:[#allocation12_spill]] }
  0x12   : > { %s814_s30 = smov [#allocation5]   ;;  %p525_p13 = scmp.ge.s32.totalorder %s812_s17, 2 }
  0x13   : > { %p909_p12 = pnand %p522_p10, %p145_p11  ;;  %s162_s4 = sshll.u32 %s814_s30, 4  ;;  %s163_s4 = int_to_ptr.vmem [resolvable:$true] %s162_s4 }
  0x14   : > { %p570_p1 = scmp.lt.s32.totalorder %s812_s17, 2  ;;  %s1047_s2 = sld [smem:[#allocation13_spill]] }
  0x15   : > { %p553_p0 = pneg %p909_p12  ;;  %s815_s9 = smov [#allocation7]  }
  0x16   : > { %p924_p4 = pnand %p570_p1, %p886_p5  ;;  %s177_s10 = sshll.u32 %s815_s9, 4  ;;  %s178_s10 = int_to_ptr.vmem [resolvable:$true] %s177_s10 }
  0x17   : > { %s160_s28 = sshll.u32 %s1045_s1, 4  ;;  %p554_p2 = pnand %p553_p0, %p882_p3  ;;  %s161_s28 = int_to_ptr.hbm [resolvable:$true] %s160_s28 }
  0x18   : > { %s188_s11 = sand.u32 1, %s800_s14   ;;  %s29_s18 = sadd.s32 1, %s808_s16 }
  0x19   : > { %556 = dma.hbm_to_vmem [thread:$0]  (!%p554_p2), %s161_s28, 64, %s163_s4, [#allocation6]  }
  0x1a   : > { %s175_s7 = sshll.u32 %s1047_s2, 4  ;;  %s539_s19 = smul.u32 12, %s188_s11  ;;  %s176_s7 = int_to_ptr.hbm [resolvable:$true] %s175_s7 }
  0x1b   : > { %559 = dma.hbm_to_vmem [thread:$0]  (!%p554_p2), %s176_s7, 64, %s178_s10, [#allocation6]  }
  0x1c   : > { %p30_p6 = scmp.ge.s32.totalorder %s29_s18, 2  ;;  %s537_s26 = sshll.u32 %s808_s16, 2 }
  0x1d   : > { %s199_s30 = scalar_lea.hbm %s1034_s0, %s537_s26  ;;  %s192_s6 = scalar_lea.vmem [#allocation2], %s539_s19 }
  0x1e   : > { %s1055_s18 = smov (%p30_p6, %s29_s18), 0  ;;  %s200_s5 = sshll.u32 %s199_s30, 4  ;;  %s201_s5 = int_to_ptr.hbm [resolvable:$true] %s200_s5 }
  0x1f   : > { %s202_s28 = sshll.u32 %s192_s6, 4  ;;  %s36_s4 = ssub.s32 %s808_s16, %s1055_s18  ;;  %s203_s28 = int_to_ptr.vmem [resolvable:$true] %s202_s28 }
  0x20   : > { %p39_p5 = scmp.eq.s32.totalorder %s36_s4, 0  ;;  %s189_s9 = scalar_lea.sflag [#allocation3], %s188_s11 }
  0x21   : > { %s816_s10 = smov 128   ;;  %s817_s1 = smov 64  }
  0x22   : > { %s941_s7 = scalar_select %p39_p5, %s800_s14, %s41_s20  }
  0x23   : > { %s818_s2 = smov 4   ;;  %214 = sbr.rel (%p909_p12) target bundleno = 345 (0x159), region = 32 }
  0x24   : > { %563 = dma.hbm_to_vmem [thread:$0]  (!%p924_p4), %s201_s5, 192, %s203_s28, %s189_s9, %s816_s10, %s817_s1, %s818_s2  }
  0x25   : > { %s948_s19 = sand.u32 (!%p909_p12), 1, %s796_s13  }
  0x26   : > { %s540_s26 = smul.u32 (!%p909_p12), 12, %s948_s19  ;;  %s217_s27 = scalar_lea.sflag (!%p909_p12), [#allocation3], %s948_s19 }
  0x28   : > { %s220_s20 = scalar_lea.vmem [#allocation2], %s540_s26 }
  0x29   : > { %779 = dma.done.wait (%p892_p7), %s217_s27, 192  }
  0x2a   : > { %781 = vsyncadd (%p892_p7), %s217_s27, 4294967104 }
  0x2b   : > { %783 = dma.done.wait (%p882_p3), [#allocation6], 128  }
  0x2c   : > { %785 = vsyncadd (%p882_p3), [#allocation6], 4294967168  ;;  %v962_v0 = vld [vmem:[%s220_s20] sm:$0xf]  ;;  %v964_v1 = vld [vmem:[%s220_s20 + $0x4] sm:$0xf] }
  0x2d   : > { %260 = vst [vmem:[#allocation1] ss:$4 sm:$0xff] %v962_v0  ;;  %v968_v2 = vld [vmem:[%s220_s20 + $0x8] sm:$0xf]  ;;  %vm276_vm0 = vcmask 1041408   ;;  %v819_v20 = vmov 256.0  }
  0x2e   : > { %264 = vst [vmem:[#allocation1 + $0x20] ss:$4 sm:$0xff] %v964_v1  ;;  %632 = vrcp.f32 %v819_v20  ;;  %s538_s1 = sshll.u32 %s804_s15, 2  ;;  %s253_s29 = scalar_lea.vmem [#allocation8], %s540_s26  ;;  %v355_v20 = vld [vmem:[#allocation7] sm:$0xf] }
  0x2f   : > { %s406_s23 = scalar_lea.hbm %s1037_s3, %s538_s1  ;;  %s407_s8 = sshll.u32 %s253_s29, 4  ;;  %s408_s8 = int_to_ptr.vmem [resolvable:$true] %s407_s8 }
  0x30   : > { %s409_s15 = sshll.u32 %s406_s23, 4  ;;  %s393_s11 = scalar_lea.sflag [#allocation4], %s948_s19  ;;  %s410_s15 = int_to_ptr.hbm [resolvable:$true] %s409_s15 }
  0x31   : > { %s740_s22 = sshra.s32 %s410_s15, 4  ;;  %s746_s28 = scalar_lea.hbm %s1037_s3, 24  ;;  %s741_s22 = int_to_ptr.hbm [resolvable:$true] %s740_s22 }
  0x32   : > { %s742_s30 = scalar_lea.hbm %s741_s22, 12  ;;  %p747_p11 = scmp.lt.s32.totalorder %s741_s22, %s1037_s3 }
  0x33   : > { %p743_p3 = scmp.ne.s32.totalorder %s741_s22, %s742_s30  ;;  %p748_p12 = scmp.lt.s32.totalorder %s746_s28, %s742_s30 }
  0x34   : > { %v261_v3 = vld.sshfl [vmem:[#allocation1] sm:$0xff pattern:$0x73625140]  ;;  %v262_v4 = vld.sshfl [vmem:[#allocation1 + $0x8] sm:$0xff pattern:$0x73625140]  ;;  %v633_v21 = vpop.eup %632 }
  0x35   : > { %v277_v5 = vsel %vm276_vm0, %v261_v3, 0.0  ;;  %v278_v6 = vsel %vm276_vm0, %v262_v4, 0.0  ;;  %267 = vst [vmem:[#allocation1] ss:$4 sm:$0xff] %v968_v2  ;;  %v293_v22 = vmul.f32 256.0, %v633_v21  ;;  %vm297_vm1 = vweird.f32 %v633_v21  ;;  %p744_p7 = pnand %p743_p3, %p896_p8  ;;  %p749_p0 = por %p748_p12, %p747_p11 }
  0x36   : > { %v279_v7 = vadd.f32 %v278_v6, %v277_v5  ;;  %v265_v8 = vld.sshfl [vmem:[#allocation1 + $0x20] sm:$0xff pattern:$0x73625140]  ;;  %v266_v9 = vld.sshfl [vmem:[#allocation1 + $0x28] sm:$0xff pattern:$0x73625140] }
  0x37   : > { %311 = vst [vmem:[#allocation1 + $0x20] ss:$4 sm:$0xff] %v964_v1  ;;  %v282_v10 = vsel %vm276_vm0, %v265_v8, 0.0  ;;  %v283_v11 = vsel %vm276_vm0, %v266_v9, 0.0  ;;  %v294_v23 = vsub.f32 1.0, %v293_v22  ;;  %p745_p10 = pneg %p744_p7 }
  0x38   : > { %280 = vadd.xlane.f32.xlu0 %v279_v7  ;;  %v284_v12 = vadd.f32 %v283_v11, %v282_v10  ;;  %v820_v3 = vmov 269488144  }
  0x39   : > { %v295_v24 = vmul.f32 %v633_v21, %v294_v23  ;;  %v358_v4 = vunpack.c.l.s4 %v820_v3  ;;  %p750_p1 = pnand %p749_p0, %p745_p10 }
  0x3b   : > { %v296_v25 = vadd.f32 %v633_v21, %v295_v24  ;;  %v359_v7 = vunpack.c.0.s8 %v358_v4 }
  0x3c   : > { %v268_v13 = vld.sshfl [vmem:[#allocation1] sm:$0xff pattern:$0x73625140]  ;;  %v269_v14 = vld.sshfl [vmem:[#allocation1 + $0x8] sm:$0xff pattern:$0x73625140] }
  0x3d   : > { %v287_v15 = vsel %vm276_vm0, %v268_v13, 0.0  ;;  %v288_v16 = vsel %vm276_vm0, %v269_v14, 0.0  ;;  %307 = vst [vmem:[#allocation1] ss:$4 sm:$0xff] %v962_v0  ;;  %v298_v29 = vsel %vm297_vm1, %v633_v21, %v296_v25  ;;  %v354_v13 = vld [vmem:[#allocation5] sm:$0xf] }
  0x3e   : > { %v289_v17 = vadd.f32 %v288_v16, %v287_v15  ;;  %v312_v27 = vld.sshfl [vmem:[#allocation1 + $0x20] sm:$0xff pattern:$0x73625140]  ;;  %v313_v28 = vld.sshfl [vmem:[#allocation1 + $0x28] sm:$0xff pattern:$0x73625140] }
  0x3f   : > { %v324_v31 = vsel %vm276_vm0, %v312_v27, 0.0  ;;  %v329_v33 = vsel %vm276_vm0, %v313_v28, 0.0 }
  0x40   : > { %285 = vadd.xlane.f32.xlu0 %v284_v12  ;;  %290 = vadd.xlane.f32.xlu1 %v289_v17 }
  0x44   : > { %v308_v18 = vld.sshfl [vmem:[#allocation1] sm:$0xff pattern:$0x73625140]  ;;  %v309_v19 = vld.sshfl [vmem:[#allocation1 + $0x8] sm:$0xff pattern:$0x73625140] }
  0x45   : > { %314 = vst [vmem:[#allocation1] ss:$4 sm:$0xff] %v968_v2  ;;  %v323_v30 = vsel %vm276_vm0, %v308_v18, 0.0  ;;  %v328_v32 = vsel %vm276_vm0, %v309_v19, 0.0 }
  0x46   : > { %v325_v39 = vadd.f32 %v324_v31, %v323_v30  ;;  %v330_v40 = vadd.f32 %v329_v33, %v328_v32 }
  0x4c   : > { %v315_v34 = vld.sshfl [vmem:[#allocation1] sm:$0xff pattern:$0x73625140]  ;;  %v316_v35 = vld.sshfl [vmem:[#allocation1 + $0x8] sm:$0xff pattern:$0x73625140] }
  0x4d   : > { %v326_v43 = vsel %vm276_vm0, %v315_v34, 0.0  ;;  %v331_v44 = vsel %vm276_vm0, %v316_v35, 0.0 }
  0x4e   : > { %v327_v49 = vadd.f32 %v326_v43, %v325_v39  ;;  %v332_v50 = vadd.f32 %v331_v44, %v330_v40 }
  0xab   : > { %v281_v26 = vpop.xlane.xlu0 %280 }
  0xac   : > { %v299_v36 = vmul.f32 %v298_v29, %v281_v26 }
  0xae   : > { %v302_v45 = vsel %vm276_vm0, %v299_v36, 0.0  ;;  %v369_v10 = vperm.slane %v299_v36, %v359_v7 }
  0xb0   : > { %v381_v16 = vsub.f32 %v962_v0, %v369_v10 }
  0xb3   : > { %v286_v37 = vpop.xlane.xlu0 %285  ;;  %v291_v38 = vpop.xlane.xlu1 %290 }
  0xb4   : > { %v300_v41 = vmul.f32 %v298_v29, %v286_v37  ;;  %v301_v42 = vmul.f32 %v298_v29, %v291_v38 }
  0xb6   : > { %v303_v46 = vsel %vm276_vm0, %v300_v41, 0.0  ;;  %v305_v47 = vsel %vm276_vm0, %v301_v42, 0.0  ;;  %v373_v11 = vperm.slane %v300_v41, %v359_v7  ;;  %v377_v12 = vperm.slane %v301_v42, %v359_v7 }
  0xb7   : > { %v304_v48 = vadd.f32 %v303_v46, %v302_v45 }
  0xb8   : > { %v382_v17 = vsub.f32 %v964_v1, %v373_v11  ;;  %v383_v18 = vsub.f32 %v968_v2, %v377_v12 }
  0xb9   : > { %v306_v51 = vadd.f32 %v305_v47, %v304_v48 }
  0xbb   : > { %v333_v52 = vsub.f32 %v327_v49, %v306_v51  ;;  %v334_v53 = vsub.f32 %v332_v50, %v306_v51 }
  0xbd   : > { %v335_v54 = vmul.f32 %v333_v52, %v333_v52  ;;  %v336_v55 = vmul.f32 %v334_v53, %v334_v53 }
  0xbf   : > { %v337_v56 = vsel %vm276_vm0, %v335_v54, 0.0  ;;  %v338_v57 = vsel %vm276_vm0, %v336_v55, 0.0 }
  0xc0   : > { %v339_v58 = vadd.f32 %v338_v57, %v337_v56 }
  0xc2   : > { %340 = vadd.xlane.f32.xlu1 %v339_v58 }
 0x135   : > { %v341_v59 = vpop.xlane.xlu1 %340 }
 0x136   : > { %v342_v60 = vmul.f32 %v341_v59, %v298_v29 }
 0x138   : > { %v343_v61 = vadd.f32 1e-05, %v342_v60 }
 0x13a   : > { %634 = vrsqrt.f32 %v343_v61  ;;  %vm350_vm3 = vweird.f32 %v343_v61 }
 0x140   : > { %v635_v62 = vpop.eup %634 }
 0x141   : > { %v345_v63 = vmul.f32 %v635_v62, %v343_v61  ;;  %vm351_vm2 = vweird.f32 %v635_v62 }
 0x142   : > { %vm352_vm4 = vmor %vm350_vm3, %vm351_vm2 }
 0x143   : > { %v346_v5 = vmul.f32 %v635_v62, %v345_v63 }
 0x145   : > { %v347_v6 = vmul.f32 0.5, %v346_v5 }
 0x147   : > { %v348_v8 = vsub.f32 1.5, %v347_v6 }
 0x149   : > { %v349_v9 = vmul.f32 %v635_v62, %v348_v8 }
 0x14b   : > { %v353_v14 = vsel %vm352_vm4, %v635_v62, %v349_v9 }
 0x14c   : > { %v360_v15 = vperm.slane %v353_v14, %v359_v7 }
 0x14e   : > { %v362_v19 = vmul.f32 %v360_v15, %v354_v13 }
 0x150   : > { %v384_v21 = vmul.f32 %v381_v16, %v362_v19  ;;  %v385_v22 = vmul.f32 %v382_v17, %v362_v19  ;;  %v386_v23 = vmul.f32 %v383_v18, %v362_v19 }
 0x152   : > { %v387_v24 = vadd.f32 %v384_v21, %v355_v20  ;;  %531 = vst [vmem:[%s253_s29 + $0x4] sm:$0xf] %v385_v22 }
 0x153   : > { %532 = vst [vmem:[%s253_s29 + $0x8] sm:$0xf] %v386_v23 }
 0x154   : > { %388 = vst [vmem:[%s253_s29] sm:$0xf] %v387_v24 }
 0x155   : > { %753 = shalt.err (!%p750_p1)
}
 0x156   : > { %s821_s10 = smov 64   ;;  %s822_s19 = smov 128  }
 0x157   : > { %s823_s26 = smov 4  }
 0x158   : > { %551 = dma.vmem_to_hbm [thread:$0]  (%p896_p8), %s408_s8, 192, %s410_s15, %s393_s11, %s821_s10, %s822_s19, %s823_s26  }
 0x159 PF: > { %s424_s27 = sand.u32 1, %s792_s12   ;;  %p565_p2 = pnand %p525_p13, %p900_p9 }
 0x15a   : > { %s425_s20 = scalar_lea.sflag [#allocation4], %s424_s27 }
 0x15b   : > { %p566_p4 = pneg %p565_p2 }
 0x15d   : > { %787 = dma.done.wait (%p566_p4), %s425_s20, 192  }
 0x15e   : > { %789 = vsyncadd (%p566_p4), %s425_s20, 4294967104  ;;  %s20_s17 = sadd.s32 1, %s812_s17   ;;  %s1049_s12 = smov %s796_s13 }
 0x15f   : > { %p17_p6 = scmp.ge.s32.totalorder %s20_s17, 4   ;;  %s1050_s13 = smov %s800_s14 }
 0x160   : > { %s1051_s14 = smov %s941_s7  ;;  %s1052_s15 = smov %s808_s16 }
 0x161   : > { %s1053_s16 = smov %s1055_s18  ;;  %19 = sbr.rel (!%p17_p6) target bundleno = 10 (0xa), region = 90 }
 0x166   :  { %431 = vsyncpa [#allocation3], 1 }
 0x167   :  { %433 = vsyncpa [#allocation3 + $0x1], 1 }
 0x168   :  { %434 = vsyncpa [#allocation6], 1 }
 0x169   :  { %435 = vsyncpa [#allocation4], 1 }
 0x16a   :  { %437 = vsyncpa [#allocation4 + $0x1], 1 }

</bundles_post_ra>
